<compile_context>
chip_gen: v7x
topology: tpu7x:2x2x1
jax: 0.10.0
libtpu: 0.0.40
codegen_flags: <defaults>
</compile_context>

<pallas_src>
import functools

import jax
import jax.numpy as jnp
from jax.experimental import pallas as pl
from jax.experimental.pallas import tpu as pltpu


# ------------------------------ helpers -------------------------------------

def _round_up(x, m):
    return -(-x // m) * m


def _plan_k(K):
    """Pick (tk, Kp) with Kp % tk == 0, tk a multiple of 128, tk <= 768."""
    if K % 128 == 0:
        for tk in (768, 512, 384, 256, 128):
            if K % tk == 0:
                return int(tk), int(K)
    if K <= 1024:
        Kp = _round_up(K, 128)
        return int(Kp), int(Kp)
    Kp = _round_up(K, 512)
    return 512, int(Kp)


def _plan_m(M):
    """Pick (tm, Mp) with Mp % tm == 0, tm a multiple of 8, tm <= 512."""
    Mp = _round_up(M, 8)
    tm = next(t for t in (512, 256, 128, 64, 32, 16, 8) if Mp % t == 0)
    if tm < 128 and Mp > 512:          # general fallback for awkward M
        Mp = _round_up(Mp, 256)
        tm = 256
    return int(tm), int(Mp)


# ----------------------------- Pallas kernels -------------------------------

def _mm_kernel(a_ref, b_ref, sh_ref, o_ref, acc_ref, *, relu):
    """o = act(A @ B + shift); A, B bf16, f32 accumulation, f32 epilogue."""
    @pl.when(pl.program_id(2) == 0)
    def _():
        acc_ref[...] = jnp.zeros_like(acc_ref)

    acc_ref[...] += jnp.dot(a_ref[...], b_ref[...],
                            preferred_element_type=jnp.float32)

    @pl.when(pl.program_id(2) == pl.num_programs(2) - 1)
    def _():
        out = acc_ref[...] + sh_ref[...]
        if relu:
            out = jnp.maximum(out, 0.0)
        o_ref[...] = out.astype(o_ref.dtype)


def _mm_add_relu_kernel(a_ref, b_ref, sh_ref, id_ref, o_ref, acc_ref):
    """o = relu(A @ B + shift + identity) -- fused bottleneck residual."""
    @pl.when(pl.program_id(2) == 0)
    def _():
        acc_ref[...] = jnp.zeros_like(acc_ref)

    acc_ref[...] += jnp.dot(a_ref[...], b_ref[...],
                            preferred_element_type=jnp.float32)

    @pl.when(pl.program_id(2) == pl.num_programs(2) - 1)
    def _():
        out = acc_ref[...] + sh_ref[...] + id_ref[...].astype(jnp.float32)
        o_ref[...] = jnp.maximum(out, 0.0).astype(o_ref.dtype)


def _max9_kernel(*refs):
    o_ref = refs[-1]
    m = refs[0][...]
    for r in refs[1:-1]:
        m = jnp.maximum(m, r[...])
    o_ref[...] = m


def _head_kernel(f_ref, w_ref, b_ref, o_ref):
    pooled = jnp.mean(f_ref[...].astype(jnp.float32), axis=1)      # (bt, 2048)
    logits = jnp.dot(pooled, w_ref[...],
                     preferred_element_type=jnp.float32) + b_ref[...]
    o_ref[...] = logits * 60.0 + 60.0                               # age rescale


# --------------------------- matmul wrapper ----------------------------------

def _matmul_bn_act(a, w, shift, identity, *, tk, relu):
    """C = act((A @ W) + shift [+ identity]) with pre-packed bf16 W."""
    M, Ka = a.shape
    Kp, Np = w.shape
    tm, Mp = _plan_m(M)
    tn = 256 if Np % 256 == 0 else 128
    if (Mp // tm) == 1 and (Np // tn) == 1 and Np >= 256:
        tn = 128                      # keep >= 2 parallel tiles for megacore
    if Ka != Kp:                      # only the stem conv (K=147->256) pads K
        a = jnp.pad(a, ((0, 0), (0, Kp - Ka)))
    if Mp != M:
        a = jnp.pad(a, ((0, Mp - M), (0, 0)))
        if identity is not None:
            identity = jnp.pad(identity, ((0, Mp - M), (0, 0)))
    a = a.astype(jnp.bfloat16)

    a_spec = pl.BlockSpec((tm, tk), lambda i, j, k: (i, k))
    b_spec = pl.BlockSpec((tk, tn), lambda i, j, k: (k, j))
    s_spec = pl.BlockSpec((1, tn), lambda i, j, k: (0, j))
    o_spec = pl.BlockSpec((tm, tn), lambda i, j, k: (i, j))
    grid = (Mp // tm, Np // tn, Kp // tk)
    scratch = [pltpu.VMEM((tm, tn), jnp.float32)]
    cparams = pltpu.CompilerParams(
        dimension_semantics=("parallel", "parallel", "arbitrary"),
        vmem_limit_bytes=32 * 1024 * 1024)

    if identity is None:
        out = pl.pallas_call(
            functools.partial(_mm_kernel, relu=relu),
            out_shape=jax.ShapeDtypeStruct((Mp, Np), jnp.bfloat16),
            grid_spec=pltpu.PrefetchScalarGridSpec(
                num_scalar_prefetch=0, grid=grid,
                in_specs=[a_spec, b_spec, s_spec],
                out_specs=o_spec, scratch_shapes=scratch),
            compiler_params=cparams,
        )(a, w, shift)
    else:
        id_spec = pl.BlockSpec((tm, tn), lambda i, j, k: (i, j))
        out = pl.pallas_call(
            _mm_add_relu_kernel,
            out_shape=jax.ShapeDtypeStruct((Mp, Np), jnp.bfloat16),
            grid_spec=pltpu.PrefetchScalarGridSpec(
                num_scalar_prefetch=0, grid=grid,
                in_specs=[a_spec, b_spec, s_spec, id_spec],
                out_specs=o_spec, scratch_shapes=scratch),
            compiler_params=cparams,
        )(a, w, shift, identity.astype(jnp.bfloat16))
    return out if Mp == M else out[:M]


# ------------------------- conv / block glue ---------------------------------

@functools.partial(jax.jit,
                   static_argnames=("kh", "kw", "stride", "pad", "tk", "relu"))
def _conv_bn_jit(x, w, shift, identity, *, kh, kw, stride, pad, tk, relu):
    n, h, wd, c = x.shape
    ho = (h + 2 * pad - kh) // stride + 1
    wo = (wd + 2 * pad - kw) // stride + 1
    if kh == 1 and kw == 1 and pad == 0:
        xs = x[:, ::stride, ::stride, :] if stride > 1 else x
        a = xs.reshape(n * ho * wo, c)
    else:
        # TODO(synk): materialized im2col (kh*kw x HBM amplification); a fused
        # implicit-GEMM conv kernel streaming taps inside the K loop would
        # remove this remaining DMA blow-up.
        xp = jnp.pad(x, ((0, 0), (pad, pad), (pad, pad), (0, 0)))
        cols = [xp[:, i:i + stride * (ho - 1) + 1:stride,
                   j:j + stride * (wo - 1) + 1:stride, :]
                for i in range(kh) for j in range(kw)]
        a = jnp.concatenate(cols, axis=-1).reshape(n * ho * wo, kh * kw * c)
    Np = w.shape[1]
    id2d = None if identity is None else identity.reshape(n * ho * wo, Np)
    out = _matmul_bn_act(a, w, shift, id2d, tk=tk, relu=relu)
    return out.reshape(n, ho, wo, Np)


def conv_bn(x, cp, relu=True, identity=None):
    return _conv_bn_jit(x, cp["w"], cp["shift"], identity,
                        kh=cp["kh"], kw=cp["kw"], stride=cp["stride"],
                        pad=cp["pad"], tk=cp["tk"], relu=relu)


@jax.jit
def maxpool_3x3_s2_p1(x):
    n, h, w, c = x.shape
    ho = (h + 2 - 3) // 2 + 1
    wo = (w + 2 - 3) // 2 + 1
    xp = jnp.pad(x, ((0, 0), (1, 1), (1, 1), (0, 0)),
                 constant_values=-jnp.inf)
    M = n * ho * wo
    taps = [xp[:, i:i + 2 * (ho - 1) + 1:2,
               j:j + 2 * (wo - 1) + 1:2, :].reshape(M, c)
            for i in range(3) for j in range(3)]
    Mp = _round_up(M, 8)
    if Mp != M:
        taps = [jnp.pad(t, ((0, Mp - M), (0, 0))) for t in taps]
    tm = next((t for t in (512, 256, 128, 64, 32, 16) if Mp % t == 0), Mp)
    out = pl.pallas_call(
        _max9_kernel,
        out_shape=jax.ShapeDtypeStruct((Mp, c), x.dtype),
        grid_spec=pltpu.PrefetchScalarGridSpec(
            num_scalar_prefetch=0, grid=(Mp // tm,),
            in_specs=[pl.BlockSpec((tm, c), lambda i: (i, 0))
                      for _ in range(9)],
            out_specs=pl.BlockSpec((tm, c), lambda i: (i, 0))),
        compiler_params=pltpu.CompilerParams(
            dimension_semantics=("parallel",)),
    )(*taps)
    out = out if Mp == M else out[:M]
    return out.reshape(n, ho, wo, c)


@jax.jit
def head(feats, fc_w, fc_b):
    n, h, w, c = feats.shape
    hw = h * w
    f = feats.reshape(n, hw, c)
    npad = _round_up(n, 8)
    if npad != n:
        f = jnp.pad(f, ((0, npad - n), (0, 0), (0, 0)))
    out = pl.pallas_call(
        _head_kernel,
        out_shape=jax.ShapeDtypeStruct((npad, 128), jnp.float32),
        grid_spec=pltpu.PrefetchScalarGridSpec(
            num_scalar_prefetch=0, grid=(npad // 8,),
            in_specs=[pl.BlockSpec((8, hw, c), lambda b: (b, 0, 0)),
                      pl.BlockSpec((c, 128), lambda b: (0, 0)),
                      pl.BlockSpec((1, 128), lambda b: (0, 0))],
            out_specs=pl.BlockSpec((8, 128), lambda b: (b, 0))),
        compiler_params=pltpu.CompilerParams(
            dimension_semantics=("parallel",)),
    )(f, fc_w, fc_b)
    return out[:n, 0:1]          # real logit is lane 0; already *60 + 60


def bottleneck(x, blk):
    identity = x
    out = conv_bn(x, blk["conv1"], relu=True)
    out = conv_bn(out, blk["conv2"], relu=True)
    if "down" in blk:
        identity = conv_bn(x, blk["down"], relu=False)
    # conv3: BN + residual add + ReLU fused into the matmul epilogue.
    return conv_bn(out, blk["conv3"], relu=True, identity=identity)


# ----------------------- deterministic parameter init -----------------------

def _init_conv(key, kh, kw, cin, cout):
    std = (2.0 / (kh * kw * cin)) ** 0.5
    return std * jax.random.normal(key, (kh, kw, cin, cout), jnp.float32)


def _init_bn(key, c, eps=1e-5):
    k1, k2, k3 = jax.random.split(key, 3)
    gamma = 1.0 + 0.1 * jax.random.normal(k1, (c,), jnp.float32)
    beta = 0.1 * jax.random.normal(k2, (c,), jnp.float32)
    running_mean = 0.1 * jax.random.normal(k3, (c,), jnp.float32)
    running_var = jnp.ones((c,), jnp.float32)
    scale = gamma / jnp.sqrt(running_var + eps)
    shift = beta - running_mean * scale
    return scale, shift


def _pack_conv(w, scale, shift, cin_in, stride, pad):
    """Fold BN scale into the weight and pack it into the padded (Kp, Np)
    bf16 matmul layout used by _matmul_bn_act (done once at init)."""
    kh, kw, cin, cout = w.shape
    Np = _round_up(cout, 128)
    w = w * scale.reshape(1, 1, 1, cout)
    if cin_in > cin:
        w = jnp.pad(w, ((0, 0), (0, 0), (0, cin_in - cin), (0, 0)))
    K = kh * kw * cin_in
    tk, Kp = _plan_k(K)
    w = w.reshape(K, cout)
    w = jnp.pad(w, ((0, Kp - K), (0, Np - cout)))
    sh = jnp.pad(shift.reshape(1, cout), ((0, 0), (0, Np - cout)))
    return {"w": w.astype(jnp.bfloat16),
            "shift": sh.astype(jnp.float32),
            "kh": int(kh), "kw": int(kw), "stride": int(stride),
            "pad": int(pad), "tk": int(tk)}


def make_resnet50_params(key):
    # TODO(synk): original module loads a MoCo checkpoint from disk; weights are
    # synthesized deterministically here instead.
    keys = iter(jax.random.split(key, 512))
    params = {}
    w = _init_conv(next(keys), 7, 7, 3, 64)
    s, sh = _init_bn(next(keys), 64)
    params["conv1"] = _pack_conv(w, s, sh, cin_in=3, stride=2, pad=3)
    in_ch = params["conv1"]["w"].shape[1]          # padded channel count (128)

    layer_cfg = [(64, 3, 1), (128, 4, 2), (256, 6, 2), (512, 3, 2)]
    inplanes = 64
    layers = []
    for planes, n_blocks, stride in layer_cfg:
        blocks = []
        for b in range(n_blocks):
            s_blk = stride if b == 0 else 1
            blk = {}
            w1 = _init_conv(next(keys), 1, 1, inplanes, planes)
            blk["conv1"] = _pack_conv(w1, *_init_bn(next(keys), planes),
                                      cin_in=in_ch, stride=1, pad=0)
            c1_out = blk["conv1"]["w"].shape[1]
            w2 = _init_conv(next(keys), 3, 3, planes, planes)
            blk["conv2"] = _pack_conv(w2, *_init_bn(next(keys), planes),
                                      cin_in=c1_out, stride=s_blk, pad=1)
            c2_out = blk["conv2"]["w"].shape[1]
            w3 = _init_conv(next(keys), 1, 1, planes, planes * 4)
            blk["conv3"] = _pack_conv(w3, *_init_bn(next(keys), planes * 4),
                                      cin_in=c2_out, stride=1, pad=0)
            if s_blk != 1 or inplanes != planes * 4:
                wd = _init_conv(next(keys), 1, 1, inplanes, planes * 4)
                blk["down"] = _pack_conv(wd, *_init_bn(next(keys), planes * 4),
                                         cin_in=in_ch, stride=s_blk, pad=0)
            inplanes = planes * 4
            in_ch = blk["conv3"]["w"].shape[1]
            blocks.append(blk)
        layers.append(blocks)
    params["layers"] = layers

    # model.fc = Linear(2048, 1); weight ~ N(0, 0.01), bias = 0. Packed to a
    # lane-dense (2048, 128) slab (only column 0 is the real output).
    fc_w = 0.01 * jax.random.normal(next(keys), (2048, 1), jnp.float32)
    params["fc_w"] = jnp.zeros((2048, 128), jnp.float32).at[:, :1].set(fc_w)
    params["fc_b"] = jnp.zeros((1, 128), jnp.float32)
    return params


# ------------------------------- forward pass --------------------------------

def age_regression_forward(x_nchw, params):
    """Mirrors RegressionNetwork.forward: resnet50(x) -> *60 + 60 -> transpose."""
    x = jnp.transpose(x_nchw.astype(jnp.float32), (0, 2, 3, 1))   # NCHW -> NHWC
    x = x.astype(jnp.bfloat16)
    x = conv_bn(x, params["conv1"], relu=True)
    x = maxpool_3x3_s2_p1(x)
    for blocks in params["layers"]:
        for blk in blocks:
            x = bottleneck(x, blk)
    out = head(x, params["fc_w"], params["fc_b"])   # (N, 1) f32, already *60+60
    return out.T                                    # torch.transpose(out, 0, 1)


if __name__ == "__main__":
    key = jax.random.PRNGKey(0)
    pkey, xkey = jax.random.split(key)
    params = make_resnet50_params(pkey)
    x = jax.random.normal(xkey, (2, 3, 64, 64), jnp.float32)   # NCHW, batch=2
    out = age_regression_forward(x, params)
    out = jax.block_until_ready(out)
    assert out.shape == (1, 2) and out.dtype == jnp.float32
    assert bool(jnp.all(jnp.isfinite(out)))
    print("KERNEL_OK")
</pallas_src>

<mosaic_0001>
module attributes {stable_mosaic.version = 11 : i64} {
  func.func @_mm_kernel(%arg0: i32, %arg1: i32, %arg2: i32, %arg3: memref<512x256xbf16, #tpu.memory_space<vmem>>, %arg4: memref<256x128xbf16, #tpu.memory_space<vmem>>, %arg5: memref<1x128xf32, #tpu.memory_space<vmem>>, %arg6: memref<512x128xbf16, #tpu.memory_space<vmem>>, %arg7: memref<512x128xf32, #tpu.memory_space<vmem>>) attributes {dimension_semantics = [#tpu.dimension_semantics<parallel>, #tpu.dimension_semantics<parallel>, #tpu.dimension_semantics<arbitrary>], iteration_bounds = array<i64: 4, 1, 1>, scalar_prefetch = 0 : i64, scratch_operands = 1 : i64, tpu.core_type = #tpu.core_type<tc>, window_params = [{transform_indices = @transform_0, window_bounds = array<i64: 512, 256>}, {transform_indices = @transform_1, window_bounds = array<i64: 256, 128>}, {transform_indices = @transform_2, window_bounds = array<i64: 1, 128>}, {transform_indices = @transform_3, window_bounds = array<i64: 512, 128>}]} {
    %c0_i32 = arith.constant 0 : i32
    %0 = arith.cmpi eq, %arg2, %c0_i32 : i32
    %1 = arith.extui %0 : i1 to i32
    %c0_i32_0 = arith.constant 0 : i32
    %2 = arith.cmpi ne, %1, %c0_i32_0 : i32
    scf.if %2 {
      %cst_10 = arith.constant 0.000000e+00 : f32
      %12 = vector.broadcast %cst_10 : f32 to vector<512x128xf32>
      %c0_11 = arith.constant 0 : index
      %c0_12 = arith.constant 0 : index
      %13 = vector.load %arg7[%c0_11, %c0_12] : memref<512x128xf32, #tpu.memory_space<vmem>>, vector<512x128xf32>
      tpu.vector_store %arg7[%c0_11, %c0_12], %12 {strides = array<i32>} : memref<512x128xf32, #tpu.memory_space<vmem>>, vector<512x128xf32>,
    } else {
    }
    %c0 = arith.constant 0 : index
    %c0_1 = arith.constant 0 : index
    %3 = vector.load %arg7[%c0, %c0_1] : memref<512x128xf32, #tpu.memory_space<vmem>>, vector<512x128xf32>
    %c0_2 = arith.constant 0 : index
    %c0_3 = arith.constant 0 : index
    %4 = vector.load %arg3[%c0_2, %c0_3] : memref<512x256xbf16, #tpu.memory_space<vmem>>, vector<512x256xbf16>
    %c0_4 = arith.constant 0 : index
    %c0_5 = arith.constant 0 : index
    %5 = vector.load %arg4[%c0_4, %c0_5] : memref<256x128xbf16, #tpu.memory_space<vmem>>, vector<256x128xbf16>
    %cst = arith.constant dense<0.000000e+00> : vector<512x128xf32>
    %6 = tpu.matmul %4, %5, %cst {dimension_numbers = #tpu.dot_dimension_numbers<[1], [0], [0], [1], [0, 0, 1, 1], [], []>} : vector<512x256xbf16>, vector<256x128xbf16>, vector<512x128xf32> -> vector<512x128xf32>
    %7 = arith.addf %3, %6 : vector<512x128xf32>
    %c0_6 = arith.constant 0 : index
    %c0_7 = arith.constant 0 : index
    %8 = vector.load %arg7[%c0_6, %c0_7] : memref<512x128xf32, #tpu.memory_space<vmem>>, vector<512x128xf32>
    tpu.vector_store %arg7[%c0_6, %c0_7], %7 {strides = array<i32>} : memref<512x128xf32, #tpu.memory_space<vmem>>, vector<512x128xf32>,
    %c0_i32_8 = arith.constant 0 : i32
    %9 = arith.cmpi eq, %arg2, %c0_i32_8 : i32
    %10 = arith.extui %9 : i1 to i32
    %c0_i32_9 = arith.constant 0 : i32
    %11 = arith.cmpi ne, %10, %c0_i32_9 : i32
    scf.if %11 {
      %c0_10 = arith.constant 0 : index
      %c0_11 = arith.constant 0 : index
      %12 = vector.load %arg7[%c0_10, %c0_11] : memref<512x128xf32, #tpu.memory_space<vmem>>, vector<512x128xf32>
      %c0_12 = arith.constant 0 : index
      %c0_13 = arith.constant 0 : index
      %13 = vector.load %arg5[%c0_12, %c0_13] : memref<1x128xf32, #tpu.memory_space<vmem>>, vector<1x128xf32>
      %14 = vector.broadcast %13 : vector<1x128xf32> to vector<512x128xf32>
      %15 = arith.addf %12, %14 : vector<512x128xf32>
      %cst_14 = arith.constant 0.000000e+00 : f32
      %16 = vector.broadcast %cst_14 : f32 to vector<512x128xf32>
      %17 = arith.maximumf %15, %16 : vector<512x128xf32>
      %18 = arith.truncf %17 : vector<512x128xf32> to vector<512x128xbf16>
      %c0_15 = arith.constant 0 : index
      %c0_16 = arith.constant 0 : index
      %19 = vector.load %arg6[%c0_15, %c0_16] : memref<512x128xbf16, #tpu.memory_space<vmem>>, vector<512x128xbf16>
      tpu.vector_store %arg6[%c0_15, %c0_16], %18 {strides = array<i32>} : memref<512x128xbf16, #tpu.memory_space<vmem>>, vector<512x128xbf16>,
    } else {
    }
    return
  }
  func.func @transform_0(%arg0: i32, %arg1: i32, %arg2: i32) -> (i32, i32) {
    %c0_i32 = arith.constant 0 : i32
    return %arg0, %arg2 : i32, i32
  }
  func.func @transform_1(%arg0: i32, %arg1: i32, %arg2: i32) -> (i32, i32) {
    %c0_i32 = arith.constant 0 : i32
    return %arg2, %arg1 : i32, i32
  }
  func.func @transform_2(%arg0: i32, %arg1: i32, %arg2: i32) -> (i32, i32) {
    %c0_i32 = arith.constant 0 : i32
    %c0_i32_0 = arith.constant 0 : i32
    return %c0_i32, %arg1 : i32, i32
  }
  func.func @transform_3(%arg0: i32, %arg1: i32, %arg2: i32) -> (i32, i32) {
    %c0_i32 = arith.constant 0 : i32
    return %arg0, %arg1 : i32, i32
  }
}

</mosaic_0001>

<bundles_post_ra>
// kernel: _conv_bn_jit.1
= control target key start
LH: loop header
LB: loop body
LE: loop exit
PB: predicated region body
PF: predicated region fallthrough
CT: control target
= control target key end

     0   :  { %8 = vsyncpa [#allocation4], 0  ;;  %s3061_s0 = inlined_call_operand.vmem [shape: bf16[2048,256], index: 0, kind: input, shape index: {}]   ;;  %s3062_s1 = inlined_call_operand.vmem [shape: bf16[256,128], index: 1, kind: input, shape index: {}]   ;;  %s3063_s2 = inlined_call_operand.vmem [shape: f32[1,128], index: 2, kind: input, shape index: {}]   ;;  %s3064_s3 = inlined_call_operand.hbm [shape: bf16[2048,128], index: 3, kind: output, shape index: {}]  }
   0x1   :  { %10 = vsyncpa [#allocation4 + $0x1], 0  ;;  %s2693_s12 = smov 0   ;;  %s2695_s13 = smov 0  }
   0x2   :  { %s2697_s14 = smov 0   ;;  %s2699_s15 = smov 0  }
   0x3   :  { %s2701_s16 = smov 0   ;;  %s2703_s17 = smov 0  }
   0x4 LB: > { %s1969_s18 = sadd.s32 4294967295, %s2667_s17   ;;  %s1970_s19 = sadd.s32 4294967294, %s2667_s17   ;;  %s2667_s17 = sphi %s2703_s17, %s16_s17   ;;  %s2663_s16 = sphi %s2701_s16, %s3071_s16   ;;  %s2659_s15 = sphi %s2699_s15, %s3070_s15   ;;  %s2655_s14 = sphi %s2697_s14, %s3069_s14   ;;  %s2651_s13 = sphi %s2695_s13, %s3068_s13   ;;  %s2647_s12 = sphi %s2693_s12, %s3067_s12  }
   0x5   : > { %s35_s20 = sadd.s32 1, %s2663_s16  ;;  %s126_s21 = sadd.s32 1, %s2655_s14 }
   0x6   : > { %p37_p0 = scmp.ge.s32.totalorder %s35_s20, 4  ;;  %p136_p1 = scmp.ne.s32.totalorder %s2655_s14, %s2651_s13 }
   0x7   : > { %p137_p2 = scmp.eq.s32.totalorder %s1969_s18, 3  ;;  %p142_p3 = scmp.ne.s32.totalorder %s2651_s13, %s2647_s12 }
   0x8   : > { %s3073_s20 = smov (%p37_p0, %s35_s20), 0  ;;  %p143_p5 = scmp.eq.s32.totalorder %s1970_s19, 3 }
   0x9   : > { %p2733_p4 = por %p137_p2, %p136_p1  ;;  %s121_s23 = ssub.s32 %s2663_s16, %s3073_s20 }
   0xa   : > { %p1975_p6 = scmp.ge.s32.totalorder %s2667_s17, 1  ;;  %p124_p7 = scmp.eq.s32.totalorder %s121_s23, 0 }
   0xb   : > { %p2740_p8 = por %p143_p5, %p142_p3  ;;  %p194_p9 = scmp.lt.s32.totalorder %s2667_s17, 5 }
   0xc   : > { %s2746_s25 = scalar_select %p124_p7, %s2655_s14, %s126_s21  }
   0xd   : > { %p195_p10 = pnand %p1975_p6, %p194_p9 }
   0xe   : > { %v2477_v0 = vld [vmem:[%s3062_s1] sm:$0xff] (!%p195_p10)   ;;  %v2669_v1 = vmov (!%p195_p10), 0   ;;  %s1977_s28 = sshll.u32 (!%p195_p10), %s2659_s15, 6  ;;  %v2478_v2 = vld [vmem:[%s3062_s1 + $0x8] sm:$0xff] (!%p195_p10)   ;;  %v2479_v3 = vld [vmem:[%s3062_s1 + $0x10] sm:$0xff] (!%p195_p10)   ;;  %s231_s5 = sand.u32 (!%p195_p10), 1, %s2651_s13  }
   0xf   : > { %198 = sbr.rel (%p195_p10) target bundleno = 434 (0x1b2), region = 32  ;;  %904 = vmatprep.subr.bf16.mxu0 (!%p195_p10), %v2669_v1  ;;  %2387 = vmatprep.subr.bf16.mxu1 (!%p195_p10), %v2669_v1  ;;  %p236_p11 = scmp.lt.s32.totalorder (!%p195_p10), %s1977_s28, 255  ;;  %v2480_v4 = vld [vmem:[%s3062_s1 + $0x18] sm:$0xff] (!%p195_p10)   ;;  %v2481_v5 = vld [vmem:[%s3062_s1 + $0x20] sm:$0xff] (!%p195_p10)   ;;  %v2482_v7 = vld [vmem:[%s3062_s1 + $0x28] sm:$0xff] (!%p195_p10)  }
  0x10   : > { %905 = vmatpush1.bf16.msra.mxu0 (!%p195_p10), %v2477_v0  ;;  %2403 = vmatpush1.bf16.msra.mxu1 (!%p195_p10), %v2477_v0  ;;  %v2483_v9 = vld [vmem:[%s3062_s1 + $0x30] sm:$0xff] (!%p195_p10)   ;;  %v2484_v10 = vld [vmem:[%s3062_s1 + $0x38] sm:$0xff] (!%p195_p10)   ;;  %v2485_v11 = vld [vmem:[%s3062_s1 + $0x40] sm:$0xff] (!%p195_p10)   ;;  %s2195_s7 = sshll.u32 (!%p195_p10), %s2659_s15, 12  ;;  %s3015_s15 = scalar_lea.sflag (!%p195_p10), [#allocation4], %s231_s5 }
  0x11   : > { %906 = vmatprep.subr.bf16.mxu0 (!%p195_p10), %v2669_v1  ;;  %2388 = vmatprep.subr.bf16.mxu1 (!%p195_p10), %v2669_v1  ;;  %v2486_v12 = vld [vmem:[%s3062_s1 + $0x48] sm:$0xff] (!%p195_p10)   ;;  %v2487_v13 = vld [vmem:[%s3062_s1 + $0x50] sm:$0xff] (!%p195_p10)   ;;  %v2488_v14 = vld [vmem:[%s3062_s1 + $0x58] sm:$0xff] (!%p195_p10)   ;;  %s3007_s11 = scalar_lea.hbm (!%p195_p10), %s3064_s3, %s2195_s7  ;;  %s2670_s21 = smov (!%p195_p10), [#allocation3]  }
  0x12   : > { %v2489_v15 = vld [vmem:[%s3062_s1 + $0x60] sm:$0xff] (!%p195_p10)   ;;  %v2490_v16 = vld [vmem:[%s3062_s1 + $0x68] sm:$0xff] (!%p195_p10)   ;;  %v2491_v17 = vld [vmem:[%s3062_s1 + $0x70] sm:$0xff] (!%p195_p10)   ;;  %s2593_s23 = sshll.u32 (!%p195_p10), %s2670_s21, 4  ;;  %s2594_s23 = int_to_ptr.vmem [resolvable:$false] %s2593_s23 }
  0x13   : > { %v2492_v18 = vld [vmem:[%s3062_s1 + $0x78] sm:$0xff] (!%p195_p10)   ;;  %s2595_s26 = scalar_lea.vmem (!%p195_p10), %s2594_s23, 8192 }
  0x14   : > { %907 = vmatpush1.bf16.msra.mxu0 (!%p195_p10), %v2478_v2  ;;  %2404 = vmatpush1.bf16.msra.mxu1 (!%p195_p10), %v2478_v2 }
  0x15   : > { %908 = vmatprep.subr.bf16.mxu0 (!%p195_p10), %v2669_v1  ;;  %2389 = vmatprep.subr.bf16.mxu1 (!%p195_p10), %v2669_v1 }
  0x16   : > { %s3075_s28 = smov (!%p236_p11, %s1977_s28), 255 }
  0x17   : > { %s2130_s8 = sshll.u32 %s3075_s28, 3 }
  0x18   : > { %909 = vmatpush1.bf16.msra.mxu0 %v2479_v3  ;;  %2405 = vmatpush1.bf16.msra.mxu1 %v2479_v3  ;;  %s2775_s19 = scalar_lea.vmem %s3061_s0, %s2130_s8 }
  0x19   : > { %910 = vmatprep.subr.bf16.mxu0 %v2669_v1  ;;  %2390 = vmatprep.subr.bf16.mxu1 %v2669_v1  ;;  %v2495_v6 = vld [vmem:[%s2775_s19 + $0x4] ss:$8 sps:$4 sm:$0xff]   ;;  %v2493_v19 = vld [vmem:[%s2775_s19] ss:$8 sps:$4 sm:$0xff]   ;;  %v2499_v21 = vld [vmem:[%s2775_s19 + $0x14] ss:$8 sps:$4 sm:$0xff]  }
  0x1a   : > { %v2498_v8 = vld [vmem:[%s2775_s19 + $0x104] ss:$8 sps:$4 sm:$0xff]   ;;  %936 = vmatprep.mubr.bf16.mxu0 %v2495_v6  ;;  %v2496_v20 = vld [vmem:[%s2775_s19 + $0x100] ss:$8 sps:$4 sm:$0xff]   ;;  %v2501_v22 = vld [vmem:[%s2775_s19 + $0x114] ss:$8 sps:$4 sm:$0xff]  }
  0x1b   : > { %1064 = vmatprep.mubr.bf16.mxu1 %v2498_v8  ;;  %v2503_v23 = vld [vmem:[%s2775_s19 + $0x10] ss:$8 sps:$4 sm:$0xff]   ;;  %v2505_v25 = vld [vmem:[%s2775_s19 + $0x24] ss:$8 sps:$4 sm:$0xff]   ;;  %v2509_v27 = vld [vmem:[%s2775_s19 + $0x20] ss:$8 sps:$4 sm:$0xff]  }
  0x1c   : > { %911 = vmatpush1.bf16.msra.mxu0 %v2480_v4  ;;  %2406 = vmatpush1.bf16.msra.mxu1 %v2480_v4  ;;  %v2504_v24 = vld [vmem:[%s2775_s19 + $0x110] ss:$8 sps:$4 sm:$0xff]   ;;  %v2507_v26 = vld [vmem:[%s2775_s19 + $0x124] ss:$8 sps:$4 sm:$0xff]   ;;  %v2510_v28 = vld [vmem:[%s2775_s19 + $0x120] ss:$8 sps:$4 sm:$0xff]  }
  0x1d   : > { %912 = vmatprep.subr.bf16.mxu0 %v2669_v1  ;;  %2391 = vmatprep.subr.bf16.mxu1 %v2669_v1  ;;  %v2511_v29 = vld [vmem:[%s2775_s19 + $0x34] ss:$8 sps:$4 sm:$0xff]   ;;  %v2515_v31 = vld [vmem:[%s2775_s19 + $0x30] ss:$8 sps:$4 sm:$0xff]   ;;  %v2517_v33 = vld [vmem:[%s2775_s19 + $0x44] ss:$8 sps:$4 sm:$0xff]  }
  0x1e   : > { %v2513_v30 = vld [vmem:[%s2775_s19 + $0x134] ss:$8 sps:$4 sm:$0xff]   ;;  %v2516_v32 = vld [vmem:[%s2775_s19 + $0x130] ss:$8 sps:$4 sm:$0xff]   ;;  %v2519_v34 = vld [vmem:[%s2775_s19 + $0x144] ss:$8 sps:$4 sm:$0xff]  }
  0x1f   : > { %v2521_v35 = vld [vmem:[%s2775_s19 + $0x40] ss:$8 sps:$4 sm:$0xff]   ;;  %v2523_v37 = vld [vmem:[%s2775_s19 + $0x54] ss:$8 sps:$4 sm:$0xff]   ;;  %v2527_v39 = vld [vmem:[%s2775_s19 + $0x50] ss:$8 sps:$4 sm:$0xff]  }
  0x20   : > { %913 = vmatpush1.bf16.msra.mxu0 %v2481_v5  ;;  %2407 = vmatpush1.bf16.msra.mxu1 %v2481_v5  ;;  %v2522_v36 = vld [vmem:[%s2775_s19 + $0x140] ss:$8 sps:$4 sm:$0xff]   ;;  %v2525_v38 = vld [vmem:[%s2775_s19 + $0x154] ss:$8 sps:$4 sm:$0xff]   ;;  %v2528_v40 = vld [vmem:[%s2775_s19 + $0x150] ss:$8 sps:$4 sm:$0xff]  }
  0x21   : > { %914 = vmatprep.subr.bf16.mxu0 %v2669_v1  ;;  %2392 = vmatprep.subr.bf16.mxu1 %v2669_v1  ;;  %v2529_v41 = vld [vmem:[%s2775_s19 + $0x64] ss:$8 sps:$4 sm:$0xff]   ;;  %v2533_v43 = vld [vmem:[%s2775_s19 + $0x60] ss:$8 sps:$4 sm:$0xff]   ;;  %v2535_v45 = vld [vmem:[%s2775_s19 + $0x74] ss:$8 sps:$4 sm:$0xff]  }
  0x22   : > { %v2531_v42 = vld [vmem:[%s2775_s19 + $0x164] ss:$8 sps:$4 sm:$0xff]   ;;  %v2534_v44 = vld [vmem:[%s2775_s19 + $0x160] ss:$8 sps:$4 sm:$0xff]   ;;  %v2537_v46 = vld [vmem:[%s2775_s19 + $0x174] ss:$8 sps:$4 sm:$0xff]  }
  0x23   : > { %v2539_v47 = vld [vmem:[%s2775_s19 + $0x70] ss:$8 sps:$4 sm:$0xff]   ;;  %v2541_v49 = vld [vmem:[%s2775_s19 + $0x84] ss:$8 sps:$4 sm:$0xff]   ;;  %v2545_v51 = vld [vmem:[%s2775_s19 + $0x80] ss:$8 sps:$4 sm:$0xff]  }
  0x24   : > { %915 = vmatpush1.bf16.msra.mxu0 %v2482_v7  ;;  %2408 = vmatpush1.bf16.msra.mxu1 %v2482_v7  ;;  %v2540_v48 = vld [vmem:[%s2775_s19 + $0x170] ss:$8 sps:$4 sm:$0xff]   ;;  %v2543_v50 = vld [vmem:[%s2775_s19 + $0x184] ss:$8 sps:$4 sm:$0xff]   ;;  %v2546_v52 = vld [vmem:[%s2775_s19 + $0x180] ss:$8 sps:$4 sm:$0xff]  }
  0x25   : > { %916 = vmatprep.subr.bf16.mxu0 %v2669_v1  ;;  %2393 = vmatprep.subr.bf16.mxu1 %v2669_v1  ;;  %v2547_v53 = vld [vmem:[%s2775_s19 + $0x94] ss:$8 sps:$4 sm:$0xff]   ;;  %v2551_v55 = vld [vmem:[%s2775_s19 + $0x90] ss:$8 sps:$4 sm:$0xff]   ;;  %v2553_v57 = vld [vmem:[%s2775_s19 + $0xa4] ss:$8 sps:$4 sm:$0xff]  }
  0x26   : > { %v2549_v54 = vld [vmem:[%s2775_s19 + $0x194] ss:$8 sps:$4 sm:$0xff]   ;;  %v2552_v56 = vld [vmem:[%s2775_s19 + $0x190] ss:$8 sps:$4 sm:$0xff]   ;;  %v2555_v58 = vld [vmem:[%s2775_s19 + $0x1a4] ss:$8 sps:$4 sm:$0xff]  }
  0x27   : > { %v2557_v59 = vld [vmem:[%s2775_s19 + $0xa0] ss:$8 sps:$4 sm:$0xff]   ;;  %v2559_v61 = vld [vmem:[%s2775_s19 + $0xb4] ss:$8 sps:$4 sm:$0xff]   ;;  %v2563_v63 = vld [vmem:[%s2775_s19 + $0xb0] ss:$8 sps:$4 sm:$0xff]  }
  0x28   : > { %917 = vmatpush1.bf16.msra.mxu0 %v2483_v9  ;;  %2409 = vmatpush1.bf16.msra.mxu1 %v2483_v9  ;;  %v2558_v60 = vld [vmem:[%s2775_s19 + $0x1a0] ss:$8 sps:$4 sm:$0xff]   ;;  %v2561_v62 = vld [vmem:[%s2775_s19 + $0x1b4] ss:$8 sps:$4 sm:$0xff]   ;;  %v2564_v0 = vld [vmem:[%s2775_s19 + $0x1b0] ss:$8 sps:$4 sm:$0xff]  }
  0x29   : > { %918 = vmatprep.subr.bf16.mxu0 %v2669_v1  ;;  %2394 = vmatprep.subr.bf16.mxu1 %v2669_v1  ;;  %v2567_v2 = vld [vmem:[%s2775_s19 + $0x1c4] ss:$8 sps:$4 sm:$0xff]   ;;  %v2569_v3 = vld [vmem:[%s2775_s19 + $0xc0] ss:$8 sps:$4 sm:$0xff]   ;;  %v2571_v5 = vld [vmem:[%s2775_s19 + $0xd4] ss:$8 sps:$4 sm:$0xff]  }
  0x2a   : > { %v2570_v4 = vld [vmem:[%s2775_s19 + $0x1c0] ss:$8 sps:$4 sm:$0xff]   ;;  %v2573_v6 = vld [vmem:[%s2775_s19 + $0x1d4] ss:$8 sps:$4 sm:$0xff]   ;;  %v2575_v7 = vld [vmem:[%s2775_s19 + $0xd0] ss:$8 sps:$4 sm:$0xff]  }
  0x2b   : > { %v2576_v8 = vld [vmem:[%s2775_s19 + $0x1d0] ss:$8 sps:$4 sm:$0xff]   ;;  %v2577_v9 = vld [vmem:[%s2775_s19 + $0xe4] ss:$8 sps:$4 sm:$0xff]  }
  0x2c   : > { %919 = vmatpush1.bf16.msra.mxu0 %v2484_v10  ;;  %2410 = vmatpush1.bf16.msra.mxu1 %v2484_v10  ;;  %v2579_v10 = vld [vmem:[%s2775_s19 + $0x1e4] ss:$8 sps:$4 sm:$0xff]  }
  0x2d   : > { %920 = vmatprep.subr.bf16.mxu0 %v2669_v1  ;;  %2395 = vmatprep.subr.bf16.mxu1 %v2669_v1 }
  0x30   : > { %921 = vmatpush1.bf16.msra.mxu0 %v2485_v11  ;;  %2411 = vmatpush1.bf16.msra.mxu1 %v2485_v11  ;;  %v2581_v11 = vld [vmem:[%s2775_s19 + $0xe0] ss:$8 sps:$4 sm:$0xff]  }
  0x31   : > { %922 = vmatprep.subr.bf16.mxu0 %v2669_v1  ;;  %2396 = vmatprep.subr.bf16.mxu1 %v2669_v1 }
  0x34   : > { %923 = vmatpush1.bf16.msra.mxu0 %v2486_v12  ;;  %2412 = vmatpush1.bf16.msra.mxu1 %v2486_v12  ;;  %v2582_v12 = vld [vmem:[%s2775_s19 + $0x1e0] ss:$8 sps:$4 sm:$0xff]  }
  0x35   : > { %924 = vmatprep.subr.bf16.mxu0 %v2669_v1  ;;  %2397 = vmatprep.subr.bf16.mxu1 %v2669_v1 }
  0x38   : > { %925 = vmatpush1.bf16.msra.mxu0 %v2487_v13  ;;  %2413 = vmatpush1.bf16.msra.mxu1 %v2487_v13  ;;  %v2583_v13 = vld [vmem:[%s2775_s19 + $0xf4] ss:$8 sps:$4 sm:$0xff]  }
  0x39   : > { %926 = vmatprep.subr.bf16.mxu0 %v2669_v1  ;;  %2398 = vmatprep.subr.bf16.mxu1 %v2669_v1 }
  0x3c   : > { %927 = vmatpush1.bf16.msra.mxu0 %v2488_v14  ;;  %2414 = vmatpush1.bf16.msra.mxu1 %v2488_v14  ;;  %v2585_v14 = vld [vmem:[%s2775_s19 + $0x1f4] ss:$8 sps:$4 sm:$0xff]  }
  0x3d   : > { %928 = vmatprep.subr.bf16.mxu0 %v2669_v1  ;;  %2399 = vmatprep.subr.bf16.mxu1 %v2669_v1 }
  0x40   : > { %929 = vmatpush1.bf16.msra.mxu0 %v2489_v15  ;;  %2415 = vmatpush1.bf16.msra.mxu1 %v2489_v15  ;;  %v2587_v15 = vld [vmem:[%s2775_s19 + $0xf0] ss:$8 sps:$4 sm:$0xff]  }
  0x41   : > { %930 = vmatprep.subr.bf16.mxu0 %v2669_v1  ;;  %2400 = vmatprep.subr.bf16.mxu1 %v2669_v1 }
  0x44   : > { %931 = vmatpush1.bf16.msra.mxu0 %v2490_v16  ;;  %2416 = vmatpush1.bf16.msra.mxu1 %v2490_v16  ;;  %v2588_v16 = vld [vmem:[%s2775_s19 + $0x1f0] ss:$8 sps:$4 sm:$0xff]  }
  0x45   : > { %932 = vmatprep.subr.bf16.mxu0 %v2669_v1  ;;  %2401 = vmatprep.subr.bf16.mxu1 %v2669_v1 }
  0x48   : > { %933 = vmatpush1.bf16.msra.mxu0 %v2491_v17  ;;  %2417 = vmatpush1.bf16.msra.mxu1 %v2491_v17  ;;  %v2901_v17 = vld [vmem:[%s3063_s2] ss:$0 sm:$0xff] }
  0x49   : > { %934 = vmatprep.subr.bf16.mxu0 %v2669_v1  ;;  %2402 = vmatprep.subr.bf16.mxu1 %v2669_v1  ;;  %v2565_v1 = vld [vmem:[%s2775_s19 + $0xc4] ss:$8 sps:$4 sm:$0xff]   ;;  %s1976_s19 = sshll.u32 %s231_s5, 8 }
  0x4a   : > { %s2910_s6 = scalar_lea.vmem [#allocation3], %s1976_s19 }
  0x4b   : > { %s1858_s8 = sshll.u32 %s2910_s6, 4  ;;  %s3009_s8 = int_to_ptr.vmem [resolvable:$true] %s1858_s8 }
  0x4c   : > { %935 = vmatpush1.bf16.msra.mxu0 %v2492_v18  ;;  %2418 = vmatpush1.bf16.msra.mxu1 %v2492_v18  ;;  %s2589_s18 = scalar_lea.vmem %s3009_s8, 4096  ;;  %p2596_p1 = scmp.lt.s32.totalorder %s3009_s8, %s2594_s23 }
  0x4d   : > { %p2590_p12 = scmp.ne.s32.totalorder %s3009_s8, %s2589_s18  ;;  %p2597_p2 = scmp.lt.s32.totalorder %s2595_s26, %s2589_s18 }
  0x4f   : > { %937 = vmatmul.mubr.bf16.vlgmr.msra.gmra.mrb[0].mxu0 %v2493_v19  ;;  %1065 = vmatmul.mubr.bf16.vlgmr.msra.gmra.mrb[0].mxu1 %v2496_v20  ;;  %p2591_p13 = pnand %p2590_p12, %p2733_p4  ;;  %p2598_p3 = por %p2597_p2, %p2596_p1 }
  0x50   : > { %944 = vmatprep.mubr.bf16.mxu0 %v2499_v21  ;;  %1072 = vmatprep.mubr.bf16.mxu1 %v2501_v22 }
  0x51   : > { %p2592_p0 = pneg %p2591_p13 }
  0x53   : > { %p2599_p5 = pnand %p2598_p3, %p2592_p0 }
  0x57   : > { %945 = vmatmul.mubr.bf16.gmra.mrb[4].mxu0 %v2503_v23  ;;  %1073 = vmatmul.mubr.bf16.gmra.mrb[4].mxu1 %v2504_v24 }
  0x58   : > { %952 = vmatprep.mubr.bf16.mxu0 %v2505_v25  ;;  %1080 = vmatprep.mubr.bf16.mxu1 %v2507_v26 }
  0x5f   : > { %953 = vmatmul.mubr.bf16.gmra.mrb[8].mxu0 %v2509_v27  ;;  %1081 = vmatmul.mubr.bf16.gmra.mrb[8].mxu1 %v2510_v28 }
  0x60   : > { %960 = vmatprep.mubr.bf16.mxu0 %v2511_v29  ;;  %1088 = vmatprep.mubr.bf16.mxu1 %v2513_v30 }
  0x67   : > { %961 = vmatmul.mubr.bf16.gmra.mrb[12].mxu0 %v2515_v31  ;;  %1089 = vmatmul.mubr.bf16.gmra.mrb[12].mxu1 %v2516_v32 }
  0x68   : > { %968 = vmatprep.mubr.bf16.mxu0 %v2517_v33  ;;  %1096 = vmatprep.mubr.bf16.mxu1 %v2519_v34 }
  0x6f   : > { %969 = vmatmul.mubr.bf16.gmra.mrb[16].mxu0 %v2521_v35  ;;  %1097 = vmatmul.mubr.bf16.gmra.mrb[16].mxu1 %v2522_v36 }
  0x70   : > { %976 = vmatprep.mubr.bf16.mxu0 %v2523_v37  ;;  %1104 = vmatprep.mubr.bf16.mxu1 %v2525_v38 }
  0x77   : > { %977 = vmatmul.mubr.bf16.gmra.mrb[20].mxu0 %v2527_v39  ;;  %1105 = vmatmul.mubr.bf16.gmra.mrb[20].mxu1 %v2528_v40 }
  0x78   : > { %984 = vmatprep.mubr.bf16.mxu0 %v2529_v41  ;;  %1112 = vmatprep.mubr.bf16.mxu1 %v2531_v42 }
  0x7f   : > { %985 = vmatmul.mubr.bf16.gmra.mrb[24].mxu0 %v2533_v43  ;;  %1113 = vmatmul.mubr.bf16.gmra.mrb[24].mxu1 %v2534_v44 }
  0x80   : > { %992 = vmatprep.mubr.bf16.mxu0 %v2535_v45  ;;  %1120 = vmatprep.mubr.bf16.mxu1 %v2537_v46 }
  0x87   : > { %993 = vmatmul.mubr.bf16.gmra.mrb[28].mxu0 %v2539_v47  ;;  %1121 = vmatmul.mubr.bf16.gmra.mrb[28].mxu1 %v2540_v48 }
  0x88   : > { %1000 = vmatprep.mubr.bf16.mxu0 %v2541_v49  ;;  %1128 = vmatprep.mubr.bf16.mxu1 %v2543_v50 }
  0x8f   : > { %1001 = vmatmul.mubr.bf16.gmra.mrb[32].mxu0 %v2545_v51  ;;  %1129 = vmatmul.mubr.bf16.gmra.mrb[32].mxu1 %v2546_v52 }
  0x90   : > { %1008 = vmatprep.mubr.bf16.mxu0 %v2547_v53  ;;  %1136 = vmatprep.mubr.bf16.mxu1 %v2549_v54 }
  0x97   : > { %1009 = vmatmul.mubr.bf16.gmra.mrb[36].mxu0 %v2551_v55  ;;  %1137 = vmatmul.mubr.bf16.gmra.mrb[36].mxu1 %v2552_v56 }
  0x98   : > { %1016 = vmatprep.mubr.bf16.mxu0 %v2553_v57  ;;  %1144 = vmatprep.mubr.bf16.mxu1 %v2555_v58 }
  0x9f   : > { %1017 = vmatmul.mubr.bf16.gmra.mrb[40].mxu0 %v2557_v59  ;;  %1145 = vmatmul.mubr.bf16.gmra.mrb[40].mxu1 %v2558_v60 }
  0xa0   : > { %1024 = vmatprep.mubr.bf16.mxu0 %v2559_v61  ;;  %1152 = vmatprep.mubr.bf16.mxu1 %v2561_v62 }
  0xa7   : > { %1025 = vmatmul.mubr.bf16.gmra.mrb[44].mxu0 %v2563_v63  ;;  %1153 = vmatmul.mubr.bf16.gmra.mrb[44].mxu1 %v2564_v0 }
  0xa8   : > { %1032 = vmatprep.mubr.bf16.mxu0 %v2565_v1  ;;  %1160 = vmatprep.mubr.bf16.mxu1 %v2567_v2 }
  0xaf   : > { %1033 = vmatmul.mubr.bf16.gmra.mrb[48].mxu0 %v2569_v3  ;;  %1161 = vmatmul.mubr.bf16.gmra.mrb[48].mxu1 %v2570_v4 }
  0xb0   : > { %1040 = vmatprep.mubr.bf16.mxu0 %v2571_v5  ;;  %1168 = vmatprep.mubr.bf16.mxu1 %v2573_v6 }
  0xb7   : > { %1041 = vmatmul.mubr.bf16.gmra.mrb[52].mxu0 %v2575_v7  ;;  %1169 = vmatmul.mubr.bf16.gmra.mrb[52].mxu1 %v2576_v8 }
  0xb8   : > { %1048 = vmatprep.mubr.bf16.mxu0 %v2577_v9  ;;  %1176 = vmatprep.mubr.bf16.mxu1 %v2579_v10 }
  0xbf   : > { %1049 = vmatmul.mubr.bf16.gmra.mrb[56].mxu0 %v2581_v11  ;;  %1177 = vmatmul.mubr.bf16.gmra.mrb[56].mxu1 %v2582_v12 }
  0xc0   : > { %1056 = vmatprep.mubr.bf16.mxu0 %v2583_v13  ;;  %1184 = vmatprep.mubr.bf16.mxu1 %v2585_v14 }
  0xc7   : > { %1057 = vmatmul.mubr.bf16.gmra.mrb[60].mxu0 %v2587_v15  ;;  %1185 = vmatmul.mubr.bf16.gmra.mrb[60].mxu1 %v2588_v16 }
 0x122   : > { %v938_v18 = vpop.f32.mrb[0].mxu0  ;;  %v1066_v19 = vpop.f32.mrb[0].mxu1 }
 0x123   : > { %v1395_v20 = vadd.f32 %v2901_v17, %v938_v18  ;;  %v1427_v21 = vadd.f32 %v2901_v17, %v1066_v19  ;;  %v940_v22 = vpop.f32.mrb[1].mxu0  ;;  %v1068_v23 = vpop.f32.mrb[1].mxu1 }
 0x124   : > { %v941_v24 = vpop.f32.mrb[2].mxu0  ;;  %v1069_v25 = vpop.f32.mrb[2].mxu1 }
 0x125   : > { %v1396_v26 = vadd.f32 %v2901_v17, %v941_v24  ;;  %v1428_v27 = vadd.f32 %v2901_v17, %v1069_v25  ;;  %v943_v28 = vpop.f32.mrb[3].mxu0  ;;  %v1071_v29 = vpop.f32.mrb[3].mxu1  ;;  %v1459_v30 = vmax.f32 %v1395_v20, 0.0  ;;  %v1491_v31 = vmax.f32 %v1427_v21, 0.0 }
 0x127   : > { %v1460_v32 = vmax.f32 %v1396_v26, 0.0  ;;  %v1492_v33 = vmax.f32 %v1428_v27, 0.0 }
 0x129   : > { %v2199_v34 = vpack.c.bf16 %v1460_v32, %v1459_v30  ;;  %v2279_v35 = vpack.c.bf16 %v1492_v33, %v1491_v31 }
 0x12a   : > { %v946_v36 = vpop.f32.mrb[4].mxu0  ;;  %v1074_v37 = vpop.f32.mrb[4].mxu1 }
 0x12b   : > { %2200 = vst [vmem:[%s2910_s6] sm:$0xff] %v2199_v34   ;;  %2371 = vst [vmem:[%s2910_s6 + $0x80] sm:$0xff] %v2279_v35   ;;  %v1397_v38 = vadd.f32 %v2901_v17, %v946_v36  ;;  %v1429_v39 = vadd.f32 %v2901_v17, %v1074_v37  ;;  %v948_v40 = vpop.f32.mrb[5].mxu0  ;;  %v1076_v41 = vpop.f32.mrb[5].mxu1 }
 0x12c   : > { %v949_v42 = vpop.f32.mrb[6].mxu0  ;;  %v1077_v43 = vpop.f32.mrb[6].mxu1 }
 0x12d   : > { %v1398_v44 = vadd.f32 %v2901_v17, %v949_v42  ;;  %v1430_v45 = vadd.f32 %v2901_v17, %v1077_v43  ;;  %v951_v46 = vpop.f32.mrb[7].mxu0  ;;  %v1079_v47 = vpop.f32.mrb[7].mxu1  ;;  %v1461_v48 = vmax.f32 %v1397_v38, 0.0  ;;  %v1493_v49 = vmax.f32 %v1429_v39, 0.0 }
 0x12f   : > { %v1462_v50 = vmax.f32 %v1398_v44, 0.0  ;;  %v1494_v51 = vmax.f32 %v1430_v45, 0.0 }
 0x131   : > { %v2204_v52 = vpack.c.bf16 %v1462_v50, %v1461_v48  ;;  %v2284_v53 = vpack.c.bf16 %v1494_v51, %v1493_v49 }
 0x132   : > { %v954_v54 = vpop.f32.mrb[8].mxu0  ;;  %v1082_v55 = vpop.f32.mrb[8].mxu1 }
 0x133   : > { %2356 = vst [vmem:[%s2910_s6 + $0x8] sm:$0xff] %v2204_v52   ;;  %2372 = vst [vmem:[%s2910_s6 + $0x88] sm:$0xff] %v2284_v53   ;;  %v1399_v56 = vadd.f32 %v2901_v17, %v954_v54  ;;  %v1431_v57 = vadd.f32 %v2901_v17, %v1082_v55  ;;  %v956_v58 = vpop.f32.mrb[9].mxu0  ;;  %v1084_v59 = vpop.f32.mrb[9].mxu1 }
 0x134   : > { %v957_v60 = vpop.f32.mrb[10].mxu0  ;;  %v1085_v61 = vpop.f32.mrb[10].mxu1 }
 0x135   : > { %v1400_v62 = vadd.f32 %v2901_v17, %v957_v60  ;;  %v1432_v63 = vadd.f32 %v2901_v17, %v1085_v61  ;;  %v959_v0 = vpop.f32.mrb[11].mxu0  ;;  %v1087_v1 = vpop.f32.mrb[11].mxu1  ;;  %v1463_v2 = vmax.f32 %v1399_v56, 0.0  ;;  %v1495_v3 = vmax.f32 %v1431_v57, 0.0 }
 0x137   : > { %v1464_v4 = vmax.f32 %v1400_v62, 0.0  ;;  %v1496_v5 = vmax.f32 %v1432_v63, 0.0 }
 0x139   : > { %v2209_v6 = vpack.c.bf16 %v1464_v4, %v1463_v2  ;;  %v2289_v7 = vpack.c.bf16 %v1496_v5, %v1495_v3 }
 0x13a   : > { %v962_v8 = vpop.f32.mrb[12].mxu0  ;;  %v1090_v9 = vpop.f32.mrb[12].mxu1 }
 0x13b   : > { %2357 = vst [vmem:[%s2910_s6 + $0x10] sm:$0xff] %v2209_v6   ;;  %2373 = vst [vmem:[%s2910_s6 + $0x90] sm:$0xff] %v2289_v7   ;;  %v1401_v10 = vadd.f32 %v2901_v17, %v962_v8  ;;  %v1433_v11 = vadd.f32 %v2901_v17, %v1090_v9  ;;  %v964_v12 = vpop.f32.mrb[13].mxu0  ;;  %v1092_v13 = vpop.f32.mrb[13].mxu1 }
 0x13c   : > { %v965_v14 = vpop.f32.mrb[14].mxu0  ;;  %v1093_v15 = vpop.f32.mrb[14].mxu1 }
 0x13d   : > { %v1402_v16 = vadd.f32 %v2901_v17, %v965_v14  ;;  %v1434_v18 = vadd.f32 %v2901_v17, %v1093_v15  ;;  %v967_v19 = vpop.f32.mrb[15].mxu0  ;;  %v1095_v20 = vpop.f32.mrb[15].mxu1  ;;  %v1465_v21 = vmax.f32 %v1401_v10, 0.0  ;;  %v1497_v22 = vmax.f32 %v1433_v11, 0.0 }
 0x13f   : > { %v1466_v23 = vmax.f32 %v1402_v16, 0.0  ;;  %v1498_v24 = vmax.f32 %v1434_v18, 0.0 }
 0x141   : > { %v2214_v25 = vpack.c.bf16 %v1466_v23, %v1465_v21  ;;  %v2294_v26 = vpack.c.bf16 %v1498_v24, %v1497_v22 }
 0x142   : > { %v970_v27 = vpop.f32.mrb[16].mxu0  ;;  %v1098_v28 = vpop.f32.mrb[16].mxu1 }
 0x143   : > { %2358 = vst [vmem:[%s2910_s6 + $0x18] sm:$0xff] %v2214_v25   ;;  %2374 = vst [vmem:[%s2910_s6 + $0x98] sm:$0xff] %v2294_v26   ;;  %v1403_v29 = vadd.f32 %v2901_v17, %v970_v27  ;;  %v1435_v30 = vadd.f32 %v2901_v17, %v1098_v28  ;;  %v972_v31 = vpop.f32.mrb[17].mxu0  ;;  %v1100_v32 = vpop.f32.mrb[17].mxu1 }
 0x144   : > { %v973_v33 = vpop.f32.mrb[18].mxu0  ;;  %v1101_v34 = vpop.f32.mrb[18].mxu1 }
 0x145   : > { %v1404_v35 = vadd.f32 %v2901_v17, %v973_v33  ;;  %v1436_v36 = vadd.f32 %v2901_v17, %v1101_v34  ;;  %v975_v37 = vpop.f32.mrb[19].mxu0  ;;  %v1103_v38 = vpop.f32.mrb[19].mxu1  ;;  %v1467_v39 = vmax.f32 %v1403_v29, 0.0  ;;  %v1499_v40 = vmax.f32 %v1435_v30, 0.0 }
 0x147   : > { %v1468_v41 = vmax.f32 %v1404_v35, 0.0  ;;  %v1500_v42 = vmax.f32 %v1436_v36, 0.0 }
 0x149   : > { %v2219_v43 = vpack.c.bf16 %v1468_v41, %v1467_v39  ;;  %v2299_v44 = vpack.c.bf16 %v1500_v42, %v1499_v40 }
 0x14a   : > { %v978_v45 = vpop.f32.mrb[20].mxu0  ;;  %v1106_v46 = vpop.f32.mrb[20].mxu1 }
 0x14b   : > { %2359 = vst [vmem:[%s2910_s6 + $0x20] sm:$0xff] %v2219_v43   ;;  %2375 = vst [vmem:[%s2910_s6 + $0xa0] sm:$0xff] %v2299_v44   ;;  %v1405_v47 = vadd.f32 %v2901_v17, %v978_v45  ;;  %v1437_v48 = vadd.f32 %v2901_v17, %v1106_v46  ;;  %v980_v49 = vpop.f32.mrb[21].mxu0  ;;  %v1108_v50 = vpop.f32.mrb[21].mxu1 }
 0x14c   : > { %v981_v51 = vpop.f32.mrb[22].mxu0  ;;  %v1109_v52 = vpop.f32.mrb[22].mxu1 }
 0x14d   : > { %v1406_v53 = vadd.f32 %v2901_v17, %v981_v51  ;;  %v1438_v54 = vadd.f32 %v2901_v17, %v1109_v52  ;;  %v983_v55 = vpop.f32.mrb[23].mxu0  ;;  %v1111_v56 = vpop.f32.mrb[23].mxu1  ;;  %v1469_v57 = vmax.f32 %v1405_v47, 0.0  ;;  %v1501_v58 = vmax.f32 %v1437_v48, 0.0 }
 0x14f   : > { %v1470_v59 = vmax.f32 %v1406_v53, 0.0  ;;  %v1502_v60 = vmax.f32 %v1438_v54, 0.0 }
 0x151   : > { %v2224_v61 = vpack.c.bf16 %v1470_v59, %v1469_v57  ;;  %v2304_v62 = vpack.c.bf16 %v1502_v60, %v1501_v58 }
 0x152   : > { %v986_v63 = vpop.f32.mrb[24].mxu0  ;;  %v1114_v0 = vpop.f32.mrb[24].mxu1 }
 0x153   : > { %2360 = vst [vmem:[%s2910_s6 + $0x28] sm:$0xff] %v2224_v61   ;;  %2376 = vst [vmem:[%s2910_s6 + $0xa8] sm:$0xff] %v2304_v62   ;;  %v1407_v1 = vadd.f32 %v2901_v17, %v986_v63  ;;  %v1439_v2 = vadd.f32 %v2901_v17, %v1114_v0  ;;  %v988_v3 = vpop.f32.mrb[25].mxu0  ;;  %v1116_v4 = vpop.f32.mrb[25].mxu1 }
 0x154   : > { %v989_v5 = vpop.f32.mrb[26].mxu0  ;;  %v1117_v6 = vpop.f32.mrb[26].mxu1 }
 0x155   : > { %v1408_v7 = vadd.f32 %v2901_v17, %v989_v5  ;;  %v1440_v8 = vadd.f32 %v2901_v17, %v1117_v6  ;;  %v991_v9 = vpop.f32.mrb[27].mxu0  ;;  %v1119_v10 = vpop.f32.mrb[27].mxu1  ;;  %v1471_v11 = vmax.f32 %v1407_v1, 0.0  ;;  %v1503_v12 = vmax.f32 %v1439_v2, 0.0 }
 0x157   : > { %v1472_v13 = vmax.f32 %v1408_v7, 0.0  ;;  %v1504_v14 = vmax.f32 %v1440_v8, 0.0 }
 0x159   : > { %v2229_v15 = vpack.c.bf16 %v1472_v13, %v1471_v11  ;;  %v2309_v16 = vpack.c.bf16 %v1504_v14, %v1503_v12 }
 0x15a   : > { %v994_v18 = vpop.f32.mrb[28].mxu0  ;;  %v1122_v19 = vpop.f32.mrb[28].mxu1 }
 0x15b   : > { %2361 = vst [vmem:[%s2910_s6 + $0x30] sm:$0xff] %v2229_v15   ;;  %2377 = vst [vmem:[%s2910_s6 + $0xb0] sm:$0xff] %v2309_v16   ;;  %v1409_v20 = vadd.f32 %v2901_v17, %v994_v18  ;;  %v1441_v21 = vadd.f32 %v2901_v17, %v1122_v19  ;;  %v996_v22 = vpop.f32.mrb[29].mxu0  ;;  %v1124_v23 = vpop.f32.mrb[29].mxu1 }
 0x15c   : > { %v997_v24 = vpop.f32.mrb[30].mxu0  ;;  %v1125_v25 = vpop.f32.mrb[30].mxu1 }
 0x15d   : > { %v1410_v26 = vadd.f32 %v2901_v17, %v997_v24  ;;  %v1442_v27 = vadd.f32 %v2901_v17, %v1125_v25  ;;  %v999_v28 = vpop.f32.mrb[31].mxu0  ;;  %v1127_v29 = vpop.f32.mrb[31].mxu1  ;;  %v1473_v30 = vmax.f32 %v1409_v20, 0.0  ;;  %v1505_v31 = vmax.f32 %v1441_v21, 0.0 }
 0x15f   : > { %v1474_v32 = vmax.f32 %v1410_v26, 0.0  ;;  %v1506_v33 = vmax.f32 %v1442_v27, 0.0 }
 0x161   : > { %v2234_v34 = vpack.c.bf16 %v1474_v32, %v1473_v30  ;;  %v2314_v35 = vpack.c.bf16 %v1506_v33, %v1505_v31 }
 0x162   : > { %v1002_v36 = vpop.f32.mrb[32].mxu0  ;;  %v1130_v37 = vpop.f32.mrb[32].mxu1 }
 0x163   : > { %2362 = vst [vmem:[%s2910_s6 + $0x38] sm:$0xff] %v2234_v34   ;;  %2378 = vst [vmem:[%s2910_s6 + $0xb8] sm:$0xff] %v2314_v35   ;;  %v1411_v38 = vadd.f32 %v2901_v17, %v1002_v36  ;;  %v1443_v39 = vadd.f32 %v2901_v17, %v1130_v37  ;;  %v1004_v40 = vpop.f32.mrb[33].mxu0  ;;  %v1132_v41 = vpop.f32.mrb[33].mxu1 }
 0x164   : > { %v1005_v42 = vpop.f32.mrb[34].mxu0  ;;  %v1133_v43 = vpop.f32.mrb[34].mxu1 }
 0x165   : > { %v1412_v44 = vadd.f32 %v2901_v17, %v1005_v42  ;;  %v1444_v45 = vadd.f32 %v2901_v17, %v1133_v43  ;;  %v1007_v46 = vpop.f32.mrb[35].mxu0  ;;  %v1135_v47 = vpop.f32.mrb[35].mxu1  ;;  %v1475_v48 = vmax.f32 %v1411_v38, 0.0  ;;  %v1507_v49 = vmax.f32 %v1443_v39, 0.0 }
 0x167   : > { %v1476_v50 = vmax.f32 %v1412_v44, 0.0  ;;  %v1508_v51 = vmax.f32 %v1444_v45, 0.0 }
 0x169   : > { %v2239_v52 = vpack.c.bf16 %v1476_v50, %v1475_v48  ;;  %v2319_v53 = vpack.c.bf16 %v1508_v51, %v1507_v49 }
 0x16a   : > { %v1010_v54 = vpop.f32.mrb[36].mxu0  ;;  %v1138_v55 = vpop.f32.mrb[36].mxu1 }
 0x16b   : > { %2363 = vst [vmem:[%s2910_s6 + $0x40] sm:$0xff] %v2239_v52   ;;  %2379 = vst [vmem:[%s2910_s6 + $0xc0] sm:$0xff] %v2319_v53   ;;  %v1413_v56 = vadd.f32 %v2901_v17, %v1010_v54  ;;  %v1445_v57 = vadd.f32 %v2901_v17, %v1138_v55  ;;  %v1012_v58 = vpop.f32.mrb[37].mxu0  ;;  %v1140_v59 = vpop.f32.mrb[37].mxu1 }
 0x16c   : > { %v1013_v60 = vpop.f32.mrb[38].mxu0  ;;  %v1141_v61 = vpop.f32.mrb[38].mxu1 }
 0x16d   : > { %v1414_v62 = vadd.f32 %v2901_v17, %v1013_v60  ;;  %v1446_v63 = vadd.f32 %v2901_v17, %v1141_v61  ;;  %v1015_v0 = vpop.f32.mrb[39].mxu0  ;;  %v1143_v1 = vpop.f32.mrb[39].mxu1  ;;  %v1477_v2 = vmax.f32 %v1413_v56, 0.0  ;;  %v1509_v3 = vmax.f32 %v1445_v57, 0.0 }
 0x16f   : > { %v1478_v4 = vmax.f32 %v1414_v62, 0.0  ;;  %v1510_v5 = vmax.f32 %v1446_v63, 0.0 }
 0x171   : > { %v2244_v6 = vpack.c.bf16 %v1478_v4, %v1477_v2  ;;  %v2324_v7 = vpack.c.bf16 %v1510_v5, %v1509_v3 }
 0x172   : > { %v1018_v8 = vpop.f32.mrb[40].mxu0  ;;  %v1146_v9 = vpop.f32.mrb[40].mxu1 }
 0x173   : > { %2364 = vst [vmem:[%s2910_s6 + $0x48] sm:$0xff] %v2244_v6   ;;  %2380 = vst [vmem:[%s2910_s6 + $0xc8] sm:$0xff] %v2324_v7   ;;  %v1415_v10 = vadd.f32 %v2901_v17, %v1018_v8  ;;  %v1447_v11 = vadd.f32 %v2901_v17, %v1146_v9  ;;  %v1020_v12 = vpop.f32.mrb[41].mxu0  ;;  %v1148_v13 = vpop.f32.mrb[41].mxu1 }
 0x174   : > { %v1021_v14 = vpop.f32.mrb[42].mxu0  ;;  %v1149_v15 = vpop.f32.mrb[42].mxu1 }
 0x175   : > { %v1416_v16 = vadd.f32 %v2901_v17, %v1021_v14  ;;  %v1448_v18 = vadd.f32 %v2901_v17, %v1149_v15  ;;  %v1023_v19 = vpop.f32.mrb[43].mxu0  ;;  %v1151_v20 = vpop.f32.mrb[43].mxu1  ;;  %v1479_v21 = vmax.f32 %v1415_v10, 0.0  ;;  %v1511_v22 = vmax.f32 %v1447_v11, 0.0 }
 0x177   : > { %v1480_v23 = vmax.f32 %v1416_v16, 0.0  ;;  %v1512_v24 = vmax.f32 %v1448_v18, 0.0 }
 0x179   : > { %v2249_v25 = vpack.c.bf16 %v1480_v23, %v1479_v21  ;;  %v2329_v26 = vpack.c.bf16 %v1512_v24, %v1511_v22 }
 0x17a   : > { %v1026_v27 = vpop.f32.mrb[44].mxu0  ;;  %v1154_v28 = vpop.f32.mrb[44].mxu1 }
 0x17b   : > { %2365 = vst [vmem:[%s2910_s6 + $0x50] sm:$0xff] %v2249_v25   ;;  %2381 = vst [vmem:[%s2910_s6 + $0xd0] sm:$0xff] %v2329_v26   ;;  %v1417_v29 = vadd.f32 %v2901_v17, %v1026_v27  ;;  %v1449_v30 = vadd.f32 %v2901_v17, %v1154_v28  ;;  %v1028_v31 = vpop.f32.mrb[45].mxu0  ;;  %v1156_v32 = vpop.f32.mrb[45].mxu1 }
 0x17c   : > { %v1029_v33 = vpop.f32.mrb[46].mxu0  ;;  %v1157_v34 = vpop.f32.mrb[46].mxu1 }
 0x17d   : > { %v1418_v35 = vadd.f32 %v2901_v17, %v1029_v33  ;;  %v1450_v36 = vadd.f32 %v2901_v17, %v1157_v34  ;;  %v1031_v37 = vpop.f32.mrb[47].mxu0  ;;  %v1159_v38 = vpop.f32.mrb[47].mxu1  ;;  %v1481_v39 = vmax.f32 %v1417_v29, 0.0  ;;  %v1513_v40 = vmax.f32 %v1449_v30, 0.0 }
 0x17f   : > { %v1482_v41 = vmax.f32 %v1418_v35, 0.0  ;;  %v1514_v42 = vmax.f32 %v1450_v36, 0.0 }
 0x181   : > { %v2254_v43 = vpack.c.bf16 %v1482_v41, %v1481_v39  ;;  %v2334_v44 = vpack.c.bf16 %v1514_v42, %v1513_v40 }
 0x182   : > { %v1034_v45 = vpop.f32.mrb[48].mxu0  ;;  %v1162_v46 = vpop.f32.mrb[48].mxu1 }
 0x183   : > { %2366 = vst [vmem:[%s2910_s6 + $0x58] sm:$0xff] %v2254_v43   ;;  %2382 = vst [vmem:[%s2910_s6 + $0xd8] sm:$0xff] %v2334_v44   ;;  %v1419_v47 = vadd.f32 %v2901_v17, %v1034_v45  ;;  %v1451_v48 = vadd.f32 %v2901_v17, %v1162_v46  ;;  %v1036_v49 = vpop.f32.mrb[49].mxu0  ;;  %v1164_v50 = vpop.f32.mrb[49].mxu1 }
 0x184   : > { %v1037_v51 = vpop.f32.mrb[50].mxu0  ;;  %v1165_v52 = vpop.f32.mrb[50].mxu1 }
 0x185   : > { %v1420_v53 = vadd.f32 %v2901_v17, %v1037_v51  ;;  %v1452_v54 = vadd.f32 %v2901_v17, %v1165_v52  ;;  %v1039_v55 = vpop.f32.mrb[51].mxu0  ;;  %v1167_v56 = vpop.f32.mrb[51].mxu1  ;;  %v1483_v57 = vmax.f32 %v1419_v47, 0.0  ;;  %v1515_v58 = vmax.f32 %v1451_v48, 0.0 }
 0x187   : > { %v1484_v59 = vmax.f32 %v1420_v53, 0.0  ;;  %v1516_v60 = vmax.f32 %v1452_v54, 0.0 }
 0x189   : > { %v2259_v61 = vpack.c.bf16 %v1484_v59, %v1483_v57  ;;  %v2339_v62 = vpack.c.bf16 %v1516_v60, %v1515_v58 }
 0x18a   : > { %v1042_v63 = vpop.f32.mrb[52].mxu0  ;;  %v1170_v0 = vpop.f32.mrb[52].mxu1 }
 0x18b   : > { %2367 = vst [vmem:[%s2910_s6 + $0x60] sm:$0xff] %v2259_v61   ;;  %2383 = vst [vmem:[%s2910_s6 + $0xe0] sm:$0xff] %v2339_v62   ;;  %v1421_v1 = vadd.f32 %v2901_v17, %v1042_v63  ;;  %v1453_v2 = vadd.f32 %v2901_v17, %v1170_v0  ;;  %v1044_v3 = vpop.f32.mrb[53].mxu0  ;;  %v1172_v4 = vpop.f32.mrb[53].mxu1 }
 0x18c   : > { %v1045_v5 = vpop.f32.mrb[54].mxu0  ;;  %v1173_v6 = vpop.f32.mrb[54].mxu1 }
 0x18d   : > { %v1422_v7 = vadd.f32 %v2901_v17, %v1045_v5  ;;  %v1454_v8 = vadd.f32 %v2901_v17, %v1173_v6  ;;  %v1047_v9 = vpop.f32.mrb[55].mxu0  ;;  %v1175_v10 = vpop.f32.mrb[55].mxu1  ;;  %v1485_v11 = vmax.f32 %v1421_v1, 0.0  ;;  %v1517_v12 = vmax.f32 %v1453_v2, 0.0 }
 0x18f   : > { %v1486_v13 = vmax.f32 %v1422_v7, 0.0  ;;  %v1518_v14 = vmax.f32 %v1454_v8, 0.0 }
 0x191   : > { %v2264_v15 = vpack.c.bf16 %v1486_v13, %v1485_v11  ;;  %v2344_v16 = vpack.c.bf16 %v1518_v14, %v1517_v12 }
 0x192   : > { %v1050_v18 = vpop.f32.mrb[56].mxu0  ;;  %v1178_v19 = vpop.f32.mrb[56].mxu1 }
 0x193   : > { %2368 = vst [vmem:[%s2910_s6 + $0x68] sm:$0xff] %v2264_v15   ;;  %2384 = vst [vmem:[%s2910_s6 + $0xe8] sm:$0xff] %v2344_v16   ;;  %v1423_v20 = vadd.f32 %v2901_v17, %v1050_v18  ;;  %v1455_v21 = vadd.f32 %v2901_v17, %v1178_v19  ;;  %v1052_v22 = vpop.f32.mrb[57].mxu0  ;;  %v1180_v23 = vpop.f32.mrb[57].mxu1 }
 0x194   : > { %v1053_v24 = vpop.f32.mrb[58].mxu0  ;;  %v1181_v25 = vpop.f32.mrb[58].mxu1 }
 0x195   : > { %v1424_v26 = vadd.f32 %v2901_v17, %v1053_v24  ;;  %v1456_v27 = vadd.f32 %v2901_v17, %v1181_v25  ;;  %v1055_v28 = vpop.f32.mrb[59].mxu0  ;;  %v1183_v29 = vpop.f32.mrb[59].mxu1  ;;  %v1487_v30 = vmax.f32 %v1423_v20, 0.0  ;;  %v1519_v31 = vmax.f32 %v1455_v21, 0.0 }
 0x197   : > { %v1488_v32 = vmax.f32 %v1424_v26, 0.0  ;;  %v1520_v33 = vmax.f32 %v1456_v27, 0.0 }
 0x199   : > { %v2269_v34 = vpack.c.bf16 %v1488_v32, %v1487_v30  ;;  %v2349_v35 = vpack.c.bf16 %v1520_v33, %v1519_v31 }
 0x19a   : > { %v1058_v36 = vpop.f32.mrb[60].mxu0  ;;  %v1186_v37 = vpop.f32.mrb[60].mxu1 }
 0x19b   : > { %2369 = vst [vmem:[%s2910_s6 + $0x70] sm:$0xff] %v2269_v34   ;;  %2385 = vst [vmem:[%s2910_s6 + $0xf0] sm:$0xff] %v2349_v35   ;;  %v1425_v38 = vadd.f32 %v2901_v17, %v1058_v36  ;;  %v1457_v39 = vadd.f32 %v2901_v17, %v1186_v37  ;;  %v1060_v40 = vpop.f32.mrb[61].mxu0  ;;  %v1188_v41 = vpop.f32.mrb[61].mxu1 }
 0x19c   : > { %v1061_v42 = vpop.f32.mrb[62].mxu0  ;;  %v1189_v43 = vpop.f32.mrb[62].mxu1 }
 0x19d   : > { %v1426_v44 = vadd.f32 %v2901_v17, %v1061_v42  ;;  %v1458_v45 = vadd.f32 %v2901_v17, %v1189_v43  ;;  %v1063_v46 = vpop.f32.mrb[63].mxu0  ;;  %v1191_v47 = vpop.f32.mrb[63].mxu1  ;;  %v1489_v48 = vmax.f32 %v1425_v38, 0.0  ;;  %v1521_v49 = vmax.f32 %v1457_v39, 0.0 }
 0x19f   : > { %v1490_v50 = vmax.f32 %v1426_v44, 0.0  ;;  %v1522_v51 = vmax.f32 %v1458_v45, 0.0 }
 0x1a1   : > { %v2274_v17 = vpack.c.bf16 %v1490_v50, %v1489_v48  ;;  %v2354_v52 = vpack.c.bf16 %v1522_v51, %v1521_v49 }
 0x1a3   : > { %2370 = vst [vmem:[%s2910_s6 + $0x78] sm:$0xff] %v2274_v17   ;;  %2386 = vst [vmem:[%s2910_s6 + $0xf8] sm:$0xff] %v2354_v52  }
 0x1a4   : > { %2602 = shalt.err (!%p2599_p5)
}
 0x1a5   : > { %s2603_s27 = scalar_lea.hbm %s3007_s11, 4096  ;;  %s2607_s30 = scalar_lea.hbm %s3064_s3, 16384 }
 0x1a6   : > { %p2604_p6 = scmp.ne.s32.totalorder %s3007_s11, %s2603_s27  ;;  %p2608_p10 = scmp.lt.u32.totalorder %s3007_s11, %s3064_s3 }
 0x1a7   : > { %p2609_p11 = scmp.lt.u32.totalorder %s2607_s30, %s2603_s27  ;;  %p2611_p13 = scmp.lt.u32.totalorder %s2603_s27, %s3007_s11 }
 0x1a8   : > { %p2605_p7 = pnand %p2604_p6, %p2733_p4 }
 0x1a9   : > { %p2610_p12 = por %p2609_p11, %p2608_p10 }
 0x1aa   : > { %p2606_p9 = pneg %p2605_p7 }
 0x1ab   : > { %p2612_p0 = por %p2611_p13, %p2610_p12 }
 0x1ad   : > { %p2613_p1 = pnand %p2612_p0, %p2606_p9 }
 0x1af   : > { %2616 = shalt.err (!%p2613_p1)
}
 0x1b0   : > { %s2671_s19 = smov 64   ;;  %s2672_s6 = smov 4  }
 0x1b1   : > { %2419 = dma.vmem_to_hbm [thread:$0]  (%p2733_p4), %s3009_s8, 4096, %s3007_s11, %s3015_s15, %s2671_s19, %s2671_s19, %s2672_s6  }
 0x1b2 PF: > { %p2425_p2 = scmp.ge.s32.totalorder %s2667_s17, 2  ;;  %s1873_s7 = sand.u32 1, %s2647_s12  }
 0x1b3   : > { %s1874_s9 = scalar_lea.sflag [#allocation4], %s1873_s7 }
 0x1b4   : > { %p2422_p3 = pnand %p2425_p2, %p2740_p8 }
 0x1b6   : > { %2642 = dma.done.wait (!%p2422_p3), %s1874_s9, 4096  }
 0x1b7   : > { %2644 = vsyncadd (!%p2422_p3), %s1874_s9, 4294963200  ;;  %s16_s17 = sadd.s32 1, %s2667_s17   ;;  %s3067_s12 = smov %s2651_s13 }
 0x1b8   : > { %p13_p5 = scmp.ge.s32.totalorder %s16_s17, 6   ;;  %s3068_s13 = smov %s2655_s14 }
 0x1b9   : > { %s3069_s14 = smov %s2746_s25  ;;  %s3070_s15 = smov %s2663_s16 }
 0x1ba   : > { %s3071_s16 = smov %s3073_s20  ;;  %15 = sbr.rel (!%p13_p5) target bundleno = 4 (0x4), region = 81 }
 0x1c1   :  { %1879 = vsyncpa [#allocation4], 1 }
 0x1c2   :  { %1881 = vsyncpa [#allocation4 + $0x1], 1 }

</bundles_post_ra>
